<compile_context>
chip_gen: v7x
topology: tpu7x:2x2x1
jax: 0.10.0
libtpu: 0.0.40
codegen_flags: <defaults>
</compile_context>

<pallas_src>
import functools

import jax
import jax.numpy as jnp
from jax.experimental import pallas as pl
from jax.experimental.pallas import tpu as pltpu


def dqn_kernel(x_ref, w1_ref, b1_ref, w2_ref, b2_ref, w3_ref, b3_ref, out_ref):
    # fc1 + relu  (bf16 MXU inputs, f32 accumulation / elementwise)
    h1 = jnp.dot(x_ref[...], w1_ref[...], preferred_element_type=jnp.float32)
    h1 = jnp.maximum(h1 + b1_ref[...], 0.0)
    # fc2 + relu
    h2 = jnp.dot(h1.astype(w2_ref.dtype), w2_ref[...],
                 preferred_element_type=jnp.float32)
    h2 = jnp.maximum(h2 + b2_ref[...], 0.0)
    # fc3 (no activation); lane-dense (padded-to-128) store
    out = jnp.dot(h2.astype(w3_ref.dtype), w3_ref[...],
                  preferred_element_type=jnp.float32)
    out_ref[...] = (out + b3_ref[...]).astype(out_ref.dtype)


def _round_up(n, m):
    return -(-n // m) * m


_MIN_TB = 16  # bf16 packs 16 rows per sublane-packed vreg


@functools.partial(
    jax.jit, static_argnames=("block_b", "out_dtype", "return_padded"))
def dqn_forward(x, params, *, block_b=2048, out_dtype=jnp.bfloat16,
                return_padded=False):
    """x: [B, state_dim] f32. params: (w1, b1, w2, b2, w3, b3), W stored [in, out].

    Returns [B, action_dim] (dtype=out_dtype), or the padded (b_pad, n_pad)
    buffer if return_padded=True (lets consumers fuse the slice/argmax).
    """
    w1, b1, w2, b2, w3, b3 = params
    B, state_dim = x.shape
    hidden = w1.shape[1]
    action_dim = w3.shape[1]

    # --- lane-dense output: pad action_dim up to a multiple of 128 ---
    n_pad = _round_up(max(action_dim, 128), 128)
    if n_pad != action_dim:
        w3 = jnp.pad(w3, ((0, 0), (0, n_pad - action_dim)))
        b3 = jnp.pad(b3, ((0, 0), (0, n_pad - action_dim)))

    # --- balanced batch tiling ---------------------------------------------
    # Tiny (latency) batches: one tile, rounded up to bf16 packing (16 rows).
    # Otherwise split into num_tiles = max(2, cdiv(B, block_b)) near-equal
    # tiles so padding waste is bounded and v7x gets >=2 grid steps.
    if B <= 2 * _MIN_TB:
        tb = _round_up(max(B, _MIN_TB), _MIN_TB)
    else:
        num_tiles = max(2, pl.cdiv(B, block_b))
        tb = _round_up(pl.cdiv(B, num_tiles), _MIN_TB)
    b_pad = _round_up(B, tb)
    if b_pad != B:
        x = jnp.pad(x, ((0, b_pad - B), (0, 0)))

    # --- bf16 MXU inputs (f32 accumulation inside kernel), f32 biases ---
    x_bf = x.astype(jnp.bfloat16)
    w1_bf = w1.astype(jnp.bfloat16)
    w2_bf = w2.astype(jnp.bfloat16)
    w3_bf = w3.astype(jnp.bfloat16)

    grid = (b_pad // tb,)

    tile_spec = lambda shape: pl.BlockSpec(shape, lambda i: (i, 0))   # batch-tiled
    full_spec = lambda shape: pl.BlockSpec(shape, lambda i: (0, 0))   # resident

    out_bytes = jnp.dtype(out_dtype).itemsize
    flops = 2 * B * (state_dim * hidden + hidden * hidden + hidden * action_dim)
    bytes_accessed = (
        B * state_dim * 2
        + (w1_bf.size + w2_bf.size + w3_bf.size) * 2
        + (b1.size + b2.size + b3.size) * 4
        + b_pad * n_pad * out_bytes
    )

    # Only needed if tb is pushed very large (f32 intermediates can exceed
    # v5e's 16 MiB default scoped-VMEM limit); harmless headroom otherwise.
    vmem_limit = 64 * 1024 * 1024 if tb > 4096 else None

    out = pl.pallas_call(
        dqn_kernel,
        out_shape=jax.ShapeDtypeStruct((b_pad, n_pad), out_dtype),
        grid=grid,
        in_specs=[
            tile_spec((tb, state_dim)),
            full_spec(w1_bf.shape), full_spec(b1.shape),
            full_spec(w2_bf.shape), full_spec(b2.shape),
            full_spec(w3_bf.shape), full_spec(b3.shape),
        ],
        out_specs=tile_spec((tb, n_pad)),
        compiler_params=pltpu.CompilerParams(
            dimension_semantics=("parallel",),
            vmem_limit_bytes=vmem_limit,
        ),
        cost_estimate=pl.CostEstimate(
            flops=flops, transcendentals=0, bytes_accessed=bytes_accessed),
    )(x_bf, w1_bf, b1, w2_bf, b2, w3_bf, b3)

    if return_padded:
        # Lane-dense padded buffer (extra lanes are exact zeros of fc3, extra
        # batch rows are bias-only); consumer fuses the slice / argmax.
        return out
    return out[:B, :action_dim]


def init_params(key, state_dim, action_dim, hidden=128):
    # Deterministic init mimicking nn.Linear default: U(-1/sqrt(fan_in), 1/sqrt(fan_in)).
    ks = jax.random.split(key, 6)

    def lin(kw, kb, fan_in, fan_out):
        bound = 1.0 / jnp.sqrt(jnp.float32(fan_in))
        w = jax.random.uniform(kw, (fan_in, fan_out), jnp.float32, -bound, bound)
        b = jax.random.uniform(kb, (1, fan_out), jnp.float32, -bound, bound)
        return w, b

    w1, b1 = lin(ks[0], ks[1], state_dim, hidden)
    w2, b2 = lin(ks[2], ks[3], hidden, hidden)
    w3, b3 = lin(ks[4], ks[5], hidden, action_dim)
    return (w1, b1, w2, b2, w3, b3)


def _ref_forward(x, params):
    # Plain-JAX reference using the same bf16 MXU inputs / f32 accumulation.
    w1, b1, w2, b2, w3, b3 = params
    bf = jnp.bfloat16
    h = jnp.maximum(jnp.dot(x.astype(bf), w1.astype(bf),
                            preferred_element_type=jnp.float32) + b1, 0.0)
    h = jnp.maximum(jnp.dot(h.astype(bf), w2.astype(bf),
                            preferred_element_type=jnp.float32) + b2, 0.0)
    return jnp.dot(h.astype(bf), w3.astype(bf),
                   preferred_element_type=jnp.float32) + b3


if __name__ == "__main__":
    key = jax.random.PRNGKey(0)
    k_x, k_p, k_x2 = jax.random.split(key, 3)

    batch, state_dim, action_dim = 8, 16, 8
    x = jax.random.normal(k_x, (batch, state_dim), jnp.float32)
    params = init_params(k_p, state_dim, action_dim)

    # Small latency-style batch (single 16-row tile), bf16 output.
    out = dqn_forward(x, params)
    jax.block_until_ready(out)
    ref = _ref_forward(x, params)
    assert out.shape == (batch, action_dim)
    assert jnp.allclose(out.astype(jnp.float32), ref, atol=1e-2, rtol=1e-2)

    # Larger batch exercising balanced tiling (B=600 -> tb=304, grid=(2,)).
    x_big = jax.random.normal(k_x2, (600, state_dim), jnp.float32)
    out_big = dqn_forward(x_big, params)
    jax.block_until_ready(out_big)
    ref_big = _ref_forward(x_big, params)
    assert out_big.shape == (600, action_dim)
    assert jnp.allclose(out_big.astype(jnp.float32), ref_big, atol=1e-2, rtol=1e-2)

    # Fused-consumer path: padded lane-dense buffer, no post-kernel slice pass.
    out_pad = dqn_forward(x_big, params, return_padded=True)
    jax.block_until_ready(out_pad)
    assert out_pad.shape[1] == 128
    assert jnp.allclose(out_pad[:600, :action_dim].astype(jnp.float32),
                        ref_big, atol=1e-2, rtol=1e-2)
    # Greedy-action example: argmax fuses directly on the padded buffer lanes.
    acts = jnp.argmax(out_pad[:600, :action_dim], axis=-1)
    assert acts.shape == (600,)

    print("KERNEL_OK")
</pallas_src>

<mosaic_0001>
module attributes {stable_mosaic.version = 11 : i64} {
  func.func @dqn_kernel(%arg0: i32, %arg1: memref<16x16xbf16, #tpu.memory_space<vmem>>, %arg2: memref<16x128xbf16, #tpu.memory_space<vmem>>, %arg3: memref<1x128xf32, #tpu.memory_space<vmem>>, %arg4: memref<128x128xbf16, #tpu.memory_space<vmem>>, %arg5: memref<1x128xf32, #tpu.memory_space<vmem>>, %arg6: memref<128x128xbf16, #tpu.memory_space<vmem>>, %arg7: memref<1x128xf32, #tpu.memory_space<vmem>>, %arg8: memref<16x128xbf16, #tpu.memory_space<vmem>>) attributes {dimension_semantics = [#tpu.dimension_semantics<parallel>], iteration_bounds = array<i64: 1>, scalar_prefetch = 0 : i64, scratch_operands = 0 : i64, tpu.core_type = #tpu.core_type<tc>, window_params = [{transform_indices = @transform_0, window_bounds = array<i64: 16, 16>}, {pipeline_mode = #tpu.pipeline_mode<synchronous>, transform_indices = @transform_1, window_bounds = array<i64: 16, 128>}, {pipeline_mode = #tpu.pipeline_mode<synchronous>, transform_indices = @transform_2, window_bounds = array<i64: 1, 128>}, {pipeline_mode = #tpu.pipeline_mode<synchronous>, transform_indices = @transform_3, window_bounds = array<i64: 128, 128>}, {pipeline_mode = #tpu.pipeline_mode<synchronous>, transform_indices = @transform_4, window_bounds = array<i64: 1, 128>}, {pipeline_mode = #tpu.pipeline_mode<synchronous>, transform_indices = @transform_5, window_bounds = array<i64: 128, 128>}, {pipeline_mode = #tpu.pipeline_mode<synchronous>, transform_indices = @transform_6, window_bounds = array<i64: 1, 128>}, {transform_indices = @transform_7, window_bounds = array<i64: 16, 128>}]} {
    %c0 = arith.constant 0 : index
    %c0_0 = arith.constant 0 : index
    %0 = vector.load %arg1[%c0, %c0_0] : memref<16x16xbf16, #tpu.memory_space<vmem>>, vector<16x16xbf16>
    %c0_1 = arith.constant 0 : index
    %c0_2 = arith.constant 0 : index
    %1 = vector.load %arg2[%c0_1, %c0_2] : memref<16x128xbf16, #tpu.memory_space<vmem>>, vector<16x128xbf16>
    %cst = arith.constant dense<0.000000e+00> : vector<16x128xf32>
    %2 = tpu.matmul %0, %1, %cst {dimension_numbers = #tpu.dot_dimension_numbers<[1], [0], [0], [1], [0, 0, 1, 1], [], []>} : vector<16x16xbf16>, vector<16x128xbf16>, vector<16x128xf32> -> vector<16x128xf32>
    %c0_3 = arith.constant 0 : index
    %c0_4 = arith.constant 0 : index
    %3 = vector.load %arg3[%c0_3, %c0_4] : memref<1x128xf32, #tpu.memory_space<vmem>>, vector<1x128xf32>
    %4 = vector.broadcast %3 : vector<1x128xf32> to vector<16x128xf32>
    %5 = arith.addf %2, %4 : vector<16x128xf32>
    %cst_5 = arith.constant 0.000000e+00 : f32
    %6 = vector.broadcast %cst_5 : f32 to vector<16x128xf32>
    %7 = arith.maximumf %5, %6 : vector<16x128xf32>
    %8 = arith.truncf %7 : vector<16x128xf32> to vector<16x128xbf16>
    %c0_6 = arith.constant 0 : index
    %c0_7 = arith.constant 0 : index
    %9 = vector.load %arg4[%c0_6, %c0_7] : memref<128x128xbf16, #tpu.memory_space<vmem>>, vector<128x128xbf16>
    %cst_8 = arith.constant dense<0.000000e+00> : vector<16x128xf32>
    %10 = tpu.matmul %8, %9, %cst_8 {dimension_numbers = #tpu.dot_dimension_numbers<[1], [0], [0], [1], [0, 0, 1, 1], [], []>} : vector<16x128xbf16>, vector<128x128xbf16>, vector<16x128xf32> -> vector<16x128xf32>
    %c0_9 = arith.constant 0 : index
    %c0_10 = arith.constant 0 : index
    %11 = vector.load %arg5[%c0_9, %c0_10] : memref<1x128xf32, #tpu.memory_space<vmem>>, vector<1x128xf32>
    %12 = vector.broadcast %11 : vector<1x128xf32> to vector<16x128xf32>
    %13 = arith.addf %10, %12 : vector<16x128xf32>
    %cst_11 = arith.constant 0.000000e+00 : f32
    %14 = vector.broadcast %cst_11 : f32 to vector<16x128xf32>
    %15 = arith.maximumf %13, %14 : vector<16x128xf32>
    %16 = arith.truncf %15 : vector<16x128xf32> to vector<16x128xbf16>
    %c0_12 = arith.constant 0 : index
    %c0_13 = arith.constant 0 : index
    %17 = vector.load %arg6[%c0_12, %c0_13] : memref<128x128xbf16, #tpu.memory_space<vmem>>, vector<128x128xbf16>
    %cst_14 = arith.constant dense<0.000000e+00> : vector<16x128xf32>
    %18 = tpu.matmul %16, %17, %cst_14 {dimension_numbers = #tpu.dot_dimension_numbers<[1], [0], [0], [1], [0, 0, 1, 1], [], []>} : vector<16x128xbf16>, vector<128x128xbf16>, vector<16x128xf32> -> vector<16x128xf32>
    %c0_15 = arith.constant 0 : index
    %c0_16 = arith.constant 0 : index
    %19 = vector.load %arg7[%c0_15, %c0_16] : memref<1x128xf32, #tpu.memory_space<vmem>>, vector<1x128xf32>
    %20 = vector.broadcast %19 : vector<1x128xf32> to vector<16x128xf32>
    %21 = arith.addf %18, %20 : vector<16x128xf32>
    %22 = arith.truncf %21 : vector<16x128xf32> to vector<16x128xbf16>
    %c0_17 = arith.constant 0 : index
    %c0_18 = arith.constant 0 : index
    %23 = vector.load %arg8[%c0_17, %c0_18] : memref<16x128xbf16, #tpu.memory_space<vmem>>, vector<16x128xbf16>
    tpu.vector_store %arg8[%c0_17, %c0_18], %22 {strides = array<i32>} : memref<16x128xbf16, #tpu.memory_space<vmem>>, vector<16x128xbf16>,
    return
  }
  func.func @transform_0(%arg0: i32) -> (i32, i32) {
    %c0_i32 = arith.constant 0 : i32
    %c0_i32_0 = arith.constant 0 : i32
    return %arg0, %c0_i32 : i32, i32
  }
  func.func @transform_1(%arg0: i32) -> (i32, i32) {
    %c0_i32 = arith.constant 0 : i32
    %c0_i32_0 = arith.constant 0 : i32
    %c0_i32_1 = arith.constant 0 : i32
    return %c0_i32, %c0_i32_0 : i32, i32
  }
  func.func @transform_2(%arg0: i32) -> (i32, i32) {
    %c0_i32 = arith.constant 0 : i32
    %c0_i32_0 = arith.constant 0 : i32
    %c0_i32_1 = arith.constant 0 : i32
    return %c0_i32, %c0_i32_0 : i32, i32
  }
  func.func @transform_3(%arg0: i32) -> (i32, i32) {
    %c0_i32 = arith.constant 0 : i32
    %c0_i32_0 = arith.constant 0 : i32
    %c0_i32_1 = arith.constant 0 : i32
    return %c0_i32, %c0_i32_0 : i32, i32
  }
  func.func @transform_4(%arg0: i32) -> (i32, i32) {
    %c0_i32 = arith.constant 0 : i32
    %c0_i32_0 = arith.constant 0 : i32
    %c0_i32_1 = arith.constant 0 : i32
    return %c0_i32, %c0_i32_0 : i32, i32
  }
  func.func @transform_5(%arg0: i32) -> (i32, i32) {
    %c0_i32 = arith.constant 0 : i32
    %c0_i32_0 = arith.constant 0 : i32
    %c0_i32_1 = arith.constant 0 : i32
    return %c0_i32, %c0_i32_0 : i32, i32
  }
  func.func @transform_6(%arg0: i32) -> (i32, i32) {
    %c0_i32 = arith.constant 0 : i32
    %c0_i32_0 = arith.constant 0 : i32
    %c0_i32_1 = arith.constant 0 : i32
    return %c0_i32, %c0_i32_0 : i32, i32
  }
  func.func @transform_7(%arg0: i32) -> (i32, i32) {
    %c0_i32 = arith.constant 0 : i32
    %c0_i32_0 = arith.constant 0 : i32
    return %arg0, %c0_i32 : i32, i32
  }
}

</mosaic_0001>

<bundles_post_ra>
// kernel: dqn_forward.1
= control target key start
LH: loop header
LB: loop body
LE: loop exit
PB: predicated region body
PF: predicated region fallthrough
CT: control target
= control target key end

     0   :  { %v455_v0 = vmov 0.0   ;;  %vm456_vm0 = vmmov 0   ;;  %vm49_vm1 = vcmask 130048   ;;  %s583_s1 = inlined_call_operand.vmem [shape: bf16[16,128], index: 1, kind: input, shape index: {}]   ;;  %s584_s0 = inlined_call_operand.vmem [shape: bf16[16,16], index: 0, kind: input, shape index: {}]   ;;  %s585_s3 = inlined_call_operand.vmem [shape: bf16[128,128], index: 3, kind: input, shape index: {}]   ;;  %s586_s5 = inlined_call_operand.vmem [shape: bf16[128,128], index: 5, kind: input, shape index: {}]   ;;  %s587_s2 = inlined_call_operand.vmem [shape: f32[1,128], index: 2, kind: input, shape index: {}]   ;;  %s588_s4 = inlined_call_operand.vmem [shape: f32[1,128], index: 4, kind: input, shape index: {}]   ;;  %s589_s6 = inlined_call_operand.vmem [shape: f32[1,128], index: 6, kind: input, shape index: {}]   ;;  %s590_s7 = inlined_call_operand.vmem [shape: bf16[16,128], index: 7, kind: output, shape index: {}]  }
   0x1   :  { %389 = vmatprep.subr.bf16.mxu0 %v455_v0  ;;  %v437_v1 = vld [vmem:[%s583_s1] sm:$0xff]   ;;  %391 = vmatprep.mubr.msk.bf16.mxu0 %vm456_vm0, %v455_v0  ;;  %v440_v4 = vld [vmem:[%s585_s3 + $0x8] sm:$0xff]   ;;  %v441_v5 = vld [vmem:[%s585_s3 + $0x10] sm:$0xff]  }
   0x2   :  { %v438_v2 = vld [vmem:[%s584_s0] sm:$0xff]   ;;  %395 = vmatprep.subr.bf16.mxu1 %v455_v0  ;;  %411 = vmatprep.mubr.msk.bf16.mxu1 %vm456_vm0, %v455_v0  ;;  %v442_v6 = vld [vmem:[%s585_s3 + $0x18] sm:$0xff]   ;;  %v444_v8 = vld [vmem:[%s585_s3 + $0x28] sm:$0xff]  }
   0x3   :  { %390 = vmatpush3.bf16.msra.mxu0 %v437_v1  ;;  %v439_v3 = vld [vmem:[%s585_s3] sm:$0xff]   ;;  %v445_v9 = vld [vmem:[%s585_s3 + $0x30] sm:$0xff]   ;;  %v446_v10 = vld [vmem:[%s585_s3 + $0x38] sm:$0xff]  }
   0x4   :  { %415 = vmatprep.subr.bf16.mxu0 %v455_v0  ;;  %396 = vmatpush3.bf16.msra.mxu1 %v439_v3  ;;  %v443_v7 = vld [vmem:[%s585_s3 + $0x20] sm:$0xff]   ;;  %v448_v12 = vld [vmem:[%s586_s5 + $0x8] sm:$0xff]   ;;  %v449_v13 = vld [vmem:[%s586_s5 + $0x10] sm:$0xff]  }
   0x5   :  { %397 = vmatprep.subr.bf16.mxu1 %v455_v0  ;;  %v447_v11 = vld [vmem:[%s586_s5] sm:$0xff]   ;;  %v450_v14 = vld [vmem:[%s586_s5 + $0x18] sm:$0xff]   ;;  %v452_v16 = vld [vmem:[%s586_s5 + $0x28] sm:$0xff]  }
   0x6   :  { %392 = vmatmul.mubr.msk.bf16.vlgmr.msra.gmra.mrb[0].mxu0 %vm49_vm1, %v438_v2  ;;  %v451_v15 = vld [vmem:[%s586_s5 + $0x20] sm:$0xff]   ;;  %v453_v27 = vld [vmem:[%s586_s5 + $0x30] sm:$0xff]   ;;  %v454_v28 = vld [vmem:[%s586_s5 + $0x38] sm:$0xff]  }
   0x7   :  { %431 = vmatprep.mubr.msk.bf16.mxu0 %vm456_vm0, %v455_v0  ;;  %416 = vmatpush3.bf16.msra.mxu0 %v447_v11  ;;  %v338_v17 = vld [vmem:[%s587_s2] ss:$0 sm:$0xff] }
   0x8   :  { %398 = vmatpush3.bf16.msra.mxu1 %v440_v4  ;;  %417 = vmatprep.subr.bf16.mxu0 %v455_v0  ;;  %v342_v29 = vld [vmem:[%s588_s4] ss:$0 sm:$0xff] }
   0x9   :  { %399 = vmatprep.subr.bf16.mxu1 %v455_v0  ;;  %v351_v39 = vld [vmem:[%s589_s6] ss:$0 sm:$0xff] }
   0xb   :  { %418 = vmatpush3.bf16.msra.mxu0 %v448_v12 }
   0xc   :  { %400 = vmatpush3.bf16.msra.mxu1 %v441_v5  ;;  %419 = vmatprep.subr.bf16.mxu0 %v455_v0 }
   0xd   :  { %401 = vmatprep.subr.bf16.mxu1 %v455_v0 }
   0xf   :  { %420 = vmatpush3.bf16.msra.mxu0 %v449_v13 }
  0x10   :  { %402 = vmatpush3.bf16.msra.mxu1 %v442_v6  ;;  %421 = vmatprep.subr.bf16.mxu0 %v455_v0 }
  0x11   :  { %403 = vmatprep.subr.bf16.mxu1 %v455_v0 }
  0x13   :  { %422 = vmatpush3.bf16.msra.mxu0 %v450_v14 }
  0x14   :  { %404 = vmatpush3.bf16.msra.mxu1 %v443_v7  ;;  %423 = vmatprep.subr.bf16.mxu0 %v455_v0 }
  0x15   :  { %405 = vmatprep.subr.bf16.mxu1 %v455_v0 }
  0x17   :  { %424 = vmatpush3.bf16.msra.mxu0 %v451_v15 }
  0x18   :  { %406 = vmatpush3.bf16.msra.mxu1 %v444_v8  ;;  %425 = vmatprep.subr.bf16.mxu0 %v455_v0 }
  0x19   :  { %407 = vmatprep.subr.bf16.mxu1 %v455_v0 }
  0x1b   :  { %426 = vmatpush3.bf16.msra.mxu0 %v452_v16 }
  0x1c   :  { %408 = vmatpush3.bf16.msra.mxu1 %v445_v9  ;;  %427 = vmatprep.subr.bf16.mxu0 %v455_v0 }
  0x1d   :  { %409 = vmatprep.subr.bf16.mxu1 %v455_v0 }
  0x1f   :  { %428 = vmatpush3.bf16.msra.mxu0 %v453_v27 }
  0x20   :  { %410 = vmatpush3.bf16.msra.mxu1 %v446_v10  ;;  %429 = vmatprep.subr.bf16.mxu0 %v455_v0 }
  0x23   :  { %430 = vmatpush3.bf16.msra.mxu0 %v454_v28 }
  0xd9   :  { %v87_v18 = vpop.f32.mrb[0].mxu0 }
  0xda   :  { %v88_v19 = vadd.f32 %v338_v17, %v87_v18  ;;  %v393_v20 = vpop.f32.mrb[1].mxu0 }
  0xdb   :  { %v90_v21 = vpop.f32.mrb[2].mxu0 }
  0xdc   :  { %v91_v22 = vadd.f32 %v338_v17, %v90_v21  ;;  %v394_v23 = vpop.f32.mrb[3].mxu0  ;;  %v94_v24 = vmax.f32 %v88_v19, 0.0 }
  0xde   :  { %v95_v25 = vmax.f32 %v91_v22, 0.0 }
  0xe0   :  { %v96_v26 = vpack.c.bf16 %v95_v25, %v94_v24 }
  0xe2   :  { %412 = vmatmul.mubr.bf16.vlgmr.msra.gmra.mrb[0].mxu1 %v96_v26 }
 0x1b5   :  { %v202_v30 = vpop.f32.mrb[0].mxu1 }
 0x1b6   :  { %v203_v31 = vadd.f32 %v342_v29, %v202_v30  ;;  %v413_v32 = vpop.f32.mrb[1].mxu1 }
 0x1b7   :  { %v205_v33 = vpop.f32.mrb[2].mxu1 }
 0x1b8   :  { %v206_v34 = vadd.f32 %v342_v29, %v205_v33  ;;  %v414_v35 = vpop.f32.mrb[3].mxu1  ;;  %v209_v36 = vmax.f32 %v203_v31, 0.0 }
 0x1ba   :  { %v210_v37 = vmax.f32 %v206_v34, 0.0 }
 0x1bc   :  { %v211_v38 = vpack.c.bf16 %v210_v37, %v209_v36 }
 0x1be   :  { %432 = vmatmul.mubr.bf16.vlgmr.msra.gmra.mrb[4].mxu0 %v211_v38 }
 0x291   :  { %v317_v40 = vpop.f32.mrb[4].mxu0 }
 0x292   :  { %v433_v41 = vpop.f32.mrb[5].mxu0  ;;  %v318_v43 = vadd.f32 %v351_v39, %v317_v40 }
 0x293   :  { %v320_v42 = vpop.f32.mrb[6].mxu0 }
 0x294   :  { %v321_v44 = vadd.f32 %v351_v39, %v320_v42  ;;  %v434_v45 = vpop.f32.mrb[7].mxu0 }
 0x296   :  { %v367_v46 = vpack.c.bf16 %v321_v44, %v318_v43 }
 0x298   :  { %368 = vst [vmem:[%s590_s7] sm:$0xff] %v367_v46  }

</bundles_post_ra>
